<compile_context>
chip_gen: v7x
topology: tpu7x:2x2x1
jax: 0.10.0
libtpu: 0.0.40
codegen_flags: <defaults>
</compile_context>

<pallas_src>
import functools
import math

import jax
import jax.numpy as jnp
from jax.experimental import pallas as pl
from jax.experimental.pallas import tpu as pltpu


def _scalarprod_kernel(x_ref, w_ref, o_ref, acc_ref):
    # x_ref: (tm, tk) row tile of x, w_ref: (1, tk) weight row slice,
    # o_ref: (tm, 1) per-row dot products, acc_ref: (tm, 1) f32 accumulator.
    k = pl.program_id(1)

    @pl.when(k == 0)
    def _init():
        acc_ref[...] = jnp.zeros_like(acc_ref)

    xf = x_ref[...].astype(jnp.float32)
    wf = w_ref[...].astype(jnp.float32)
    # VPU broadcast-multiply + XLU lane reduction (no MXU matvec).
    acc_ref[...] += jnp.sum(xf * wf, axis=-1, keepdims=True)

    @pl.when(k == pl.num_programs(1) - 1)
    def _finalize():
        o_ref[...] = acc_ref[...].astype(o_ref.dtype)


def _choose_tiles(m, n, itemsize):
    """Pick (tm, tk) respecting the (8,128) tiling rule and a VMEM budget."""
    sub = max(8, 32 // itemsize)  # sublane multiple: 8 for f32, 16 for bf16

    # K (lane) tile: split only when N is large and cleanly 128-aligned,
    # otherwise take the full feature axis as one block.
    tk = n
    if n > 8192 and n % 128 == 0:
        for cand in (2048, 1024, 512, 256, 128):
            if n % cand == 0:
                tk = cand
                break

    # Row tile: as big as fits a conservative double-buffered x budget
    # (safe under v7x's 64 MiB VMEM / default scoped limits), capped at 1024.
    x_budget = 24 * 1024 * 1024  # bytes for 2 x (tm, tk) x-buffers
    tm = x_budget // (2 * tk * itemsize)
    tm = max(sub, min(1024, (tm // sub) * sub))
    if tm >= m:
        tm = m  # full-extent block is always legal
    return tm, tk


@functools.partial(jax.jit, static_argnames=("tm", "tk"))
def scalar_prod(x, w, *, tm=None, tk=None):
    """matmul(x, w) with w of shape (N,): contracts the last axis of x."""
    *lead, n = x.shape
    assert w.shape == (n,), f"weight shape {w.shape} != ({n},)"
    out_dtype = jnp.result_type(x.dtype, w.dtype)

    m = math.prod(lead)
    x2 = x.reshape(m, n)
    w_row = w.reshape(1, n)

    itemsize = jnp.dtype(x.dtype).itemsize
    auto_tm, auto_tk = _choose_tiles(m, n, itemsize)
    tm = auto_tm if tm is None else tm
    tk = auto_tk if tk is None else tk
    assert n % tk == 0, "K tile must divide N exactly (no lane masking in-kernel)"
    nk = n // tk
    gm = pl.cdiv(m, tm)

    out = pl.pallas_call(
        _scalarprod_kernel,
        out_shape=jax.ShapeDtypeStruct((m, 1), out_dtype),
        grid=(gm, nk),
        in_specs=[
            pl.BlockSpec((tm, tk), lambda i, k: (i, k)),   # x row/K tile
            pl.BlockSpec((1, tk), lambda i, k: (0, k)),    # weight row slice
        ],
        out_specs=pl.BlockSpec((tm, 1), lambda i, k: (i, 0)),
        scratch_shapes=[pltpu.VMEM((tm, 1), jnp.float32)],
        compiler_params=pltpu.CompilerParams(
            dimension_semantics=("parallel", "arbitrary"),
            vmem_limit_bytes=64 * 1024 * 1024,
        ),
    )(x2, w_row)

    return out[:, 0].reshape(tuple(lead))


if __name__ == "__main__":
    key = jax.random.PRNGKey(0)
    k1, k2, k3, k4, k5, k6 = jax.random.split(key, 6)

    # 1) Small shapes consistent with the module: x (B, S, N), w (N,).
    B, S, N = 2, 8, 32
    x = jax.random.normal(k1, (B, S, N), dtype=jnp.float32)
    w = jax.random.normal(k2, (N,), dtype=jnp.float32)  # module init is zeros(n);
    # non-trivial values actually exercise the kernel.
    out = scalar_prod(x, w)
    jax.block_until_ready(out)
    ref = jnp.matmul(x, w)
    assert out.shape == ref.shape == (B, S)
    assert jnp.allclose(out, ref, atol=1e-4, rtol=1e-4), "mismatch (basic case)"

    # 2) Rows not divisible by the tile: exercises Pallas partial-block
    #    masking (no host-side pad).
    x_r = jax.random.normal(k3, (20, N), dtype=jnp.float32)
    w_r = jax.random.normal(k4, (N,), dtype=jnp.float32)
    out_r = scalar_prod(x_r, w_r, tm=8)
    jax.block_until_ready(out_r)
    assert jnp.allclose(out_r, jnp.matmul(x_r, w_r), atol=1e-4, rtol=1e-4), \
        "mismatch (partial row block)"

    # 3) K-split path: accumulate over 2 feature tiles of 128 lanes.
    N2 = 256
    x_k = jax.random.normal(k5, (B, S, N2), dtype=jnp.float32)
    w_k = jax.random.normal(k6, (N2,), dtype=jnp.float32)
    out_k = scalar_prod(x_k, w_k, tk=128)
    jax.block_until_ready(out_k)
    assert jnp.allclose(out_k, jnp.matmul(x_k, w_k), atol=1e-4, rtol=1e-4), \
        "mismatch (K-split accumulation)"

    print("KERNEL_OK")
</pallas_src>

<mosaic_0001>
module attributes {stable_mosaic.version = 11 : i64} {
  func.func @_scalarprod_kernel(%arg0: i32, %arg1: i32, %arg2: memref<16x32xf32, #tpu.memory_space<vmem>>, %arg3: memref<1x32xf32, #tpu.memory_space<vmem>>, %arg4: memref<16x1xf32, #tpu.memory_space<vmem>>, %arg5: memref<16x1xf32, #tpu.memory_space<vmem>>) attributes {dimension_semantics = [#tpu.dimension_semantics<parallel>, #tpu.dimension_semantics<arbitrary>], iteration_bounds = array<i64: 1, 1>, scalar_prefetch = 0 : i64, scratch_operands = 1 : i64, tpu.core_type = #tpu.core_type<tc>, window_params = [{transform_indices = @transform_0, window_bounds = array<i64: 16, 32>}, {transform_indices = @transform_1, window_bounds = array<i64: 1, 32>}, {transform_indices = @transform_2, window_bounds = array<i64: 16, 1>}]} {
    %c0_i32 = arith.constant 0 : i32
    %0 = arith.cmpi eq, %arg1, %c0_i32 : i32
    %1 = arith.extui %0 : i1 to i32
    %c0_i32_0 = arith.constant 0 : i32
    %2 = arith.cmpi ne, %1, %c0_i32_0 : i32
    scf.if %2 {
      %cst_10 = arith.constant 0.000000e+00 : f32
      %15 = vector.broadcast %cst_10 : f32 to vector<16x1xf32>
      %c0_11 = arith.constant 0 : index
      %c0_12 = arith.constant 0 : index
      %16 = vector.load %arg5[%c0_11, %c0_12] : memref<16x1xf32, #tpu.memory_space<vmem>>, vector<16x1xf32>
      tpu.vector_store %arg5[%c0_11, %c0_12], %15 {strides = array<i32>} : memref<16x1xf32, #tpu.memory_space<vmem>>, vector<16x1xf32>,
    } else {
    }
    %c0 = arith.constant 0 : index
    %c0_1 = arith.constant 0 : index
    %3 = vector.load %arg2[%c0, %c0_1] : memref<16x32xf32, #tpu.memory_space<vmem>>, vector<16x32xf32>
    %c0_2 = arith.constant 0 : index
    %c0_3 = arith.constant 0 : index
    %4 = vector.load %arg3[%c0_2, %c0_3] : memref<1x32xf32, #tpu.memory_space<vmem>>, vector<1x32xf32>
    %c0_4 = arith.constant 0 : index
    %c0_5 = arith.constant 0 : index
    %5 = vector.load %arg5[%c0_4, %c0_5] : memref<16x1xf32, #tpu.memory_space<vmem>>, vector<16x1xf32>
    %6 = vector.broadcast %4 : vector<1x32xf32> to vector<16x32xf32>
    %7 = arith.mulf %3, %6 : vector<16x32xf32>
    %cst = arith.constant dense<0.000000e+00> : vector<16xf32>
    %8 = vector.multi_reduction <add>, %7, %cst [1] : vector<16x32xf32> to vector<16xf32>
    %9 = vector.shape_cast %8 : vector<16xf32> to vector<16x1xf32>
    %10 = arith.addf %5, %9 : vector<16x1xf32>
    %c0_6 = arith.constant 0 : index
    %c0_7 = arith.constant 0 : index
    %11 = vector.load %arg5[%c0_6, %c0_7] : memref<16x1xf32, #tpu.memory_space<vmem>>, vector<16x1xf32>
    tpu.vector_store %arg5[%c0_6, %c0_7], %10 {strides = array<i32>} : memref<16x1xf32, #tpu.memory_space<vmem>>, vector<16x1xf32>,
    %c0_i32_8 = arith.constant 0 : i32
    %12 = arith.cmpi eq, %arg1, %c0_i32_8 : i32
    %13 = arith.extui %12 : i1 to i32
    %c0_i32_9 = arith.constant 0 : i32
    %14 = arith.cmpi ne, %13, %c0_i32_9 : i32
    scf.if %14 {
      %c0_10 = arith.constant 0 : index
      %c0_11 = arith.constant 0 : index
      %15 = vector.load %arg5[%c0_10, %c0_11] : memref<16x1xf32, #tpu.memory_space<vmem>>, vector<16x1xf32>
      %c0_12 = arith.constant 0 : index
      %c0_13 = arith.constant 0 : index
      %16 = vector.load %arg4[%c0_12, %c0_13] : memref<16x1xf32, #tpu.memory_space<vmem>>, vector<16x1xf32>
      tpu.vector_store %arg4[%c0_12, %c0_13], %15 {strides = array<i32>} : memref<16x1xf32, #tpu.memory_space<vmem>>, vector<16x1xf32>,
    } else {
    }
    return
  }
  func.func @transform_0(%arg0: i32, %arg1: i32) -> (i32, i32) {
    %c0_i32 = arith.constant 0 : i32
    return %arg0, %arg1 : i32, i32
  }
  func.func @transform_1(%arg0: i32, %arg1: i32) -> (i32, i32) {
    %c0_i32 = arith.constant 0 : i32
    %c0_i32_0 = arith.constant 0 : i32
    return %c0_i32, %arg1 : i32, i32
  }
  func.func @transform_2(%arg0: i32, %arg1: i32) -> (i32, i32) {
    %c0_i32 = arith.constant 0 : i32
    %c0_i32_0 = arith.constant 0 : i32
    return %arg0, %c0_i32 : i32, i32
  }
}

</mosaic_0001>

<bundles_post_ra>
// kernel: squeeze.1
= control target key start
LH: loop header
LB: loop body
LE: loop exit
PB: predicated region body
PF: predicated region fallthrough
CT: control target
= control target key end

     0   :  { %s85_s0 = inlined_call_operand.vmem [shape: f32[16], index: 0, kind: input, shape index: {}]   ;;  %s86_s1 = inlined_call_operand.hbm [shape: f32[2,8], index: 1, kind: output, shape index: {}]  }
   0x1   :  { %v5_v0 = vld [vmem:[%s85_s0] sm:$0x1] }
   0x2   :  { %2 = vsyncpa [#allocation1], 0  ;;  %6 = vst [vmem:[#allocation3] sm:$0x1] %v5_v0  ;;  %vm8_vm0 = vcmask 64512   ;;  %s58_s0 = smov 120  }
   0x3   :  { %s59_s8 = smov [#allocation0]  }
   0x4   :  { %s26_s9 = sshll.u32 %s59_s8, 4  ;;  %s27_s9 = int_to_ptr.vmem [resolvable:$true] %s26_s9 }
   0x5   :  { %s34_s10 = scalar_lea.vmem %s27_s9, 32  ;;  %p39_p1 = scmp.lt.s32.totalorder %s27_s9, %s27_s9 }
   0x6   :  { %p35_p0 = scmp.ne.s32.totalorder %s27_s9, %s34_s10  ;;  %p40_p2 = scmp.lt.s32.totalorder %s34_s10, %s34_s10 }
   0x8   :  { %p41_p3 = por %p40_p2, %p39_p1 }
   0x9   :  { %v10_v1 = vld [vmem:[#allocation3] sm:$0x1]  }
   0xa   :  { %v7_v2 = vld [vmem:[#allocation3] sm:$0x1]   ;;  %11 = vrot.lane.b32.xlu0 %v10_v1, %s58_s0  ;;  %p42_p4 = pnand %p41_p3, %p35_p0 }
   0xb   :  { %9 = vst.msk [vmem:[#allocation2] sm:$0x1] %vm8_vm0, %v7_v2  }
  0x7c   :  { %v12_v3 = vpop.permute.xlu0 %11  }
  0x7d   :  { %15 = vst.msk [vmem:[#allocation2 + $0x1] sm:$0x1] %vm8_vm0, %v12_v3  }
  0x84   :  { %v19_v4 = vld [vmem:[#allocation2] sm:$0x3] }
  0x85   :  { %21 = vst [vmem:[#allocation0] sm:$0x3] %v19_v4 }
  0x86   :  { %45 = shalt.err (!%p42_p4)
}
  0x87   :  { %s46_s13 = scalar_lea.hbm %s86_s1, 32 }
  0x88   :  { %p47_p5 = scmp.ne.s32.totalorder %s86_s1, %s46_s13  ;;  %p50_p6 = scmp.lt.u32.totalorder %s46_s13, %s86_s1 }
  0x8a   :  { %p52_p7 = pnand %p50_p6, %p47_p5 }
  0x8c   :  { %55 = shalt.err (!%p52_p7)
}
  0x8d   :  { %29 = dma.vmem_to_hbm [thread:$0]  %s27_s9, 32, %s86_s1, [#allocation1]  }
  0x8e   :  { %56 = dma.done.wait [#allocation1], 32  }
  0x8f   :  { %57 = vsyncadd [#allocation1], 4294967264 }
  0x90   :  { %31 = vsyncpa [#allocation1], 1 }

// kernel: scalar_prod.1
= control target key start
LH: loop header
LB: loop body
LE: loop exit
PB: predicated region body
PF: predicated region fallthrough
CT: control target
= control target key end

     0   :  { %7 = vsyncpa [#allocation4], 0  ;;  %s243_s0 = inlined_call_operand.hbm [shape: f32[16,32], index: 0, kind: input, shape index: {}]   ;;  %s244_s1 = inlined_call_operand.hbm [shape: f32[1,32], index: 1, kind: input, shape index: {}]   ;;  %s245_s2 = inlined_call_operand.hbm [shape: f32[16,1], index: 2, kind: output, shape index: {}]  }
   0x1   :  { %8 = vsyncpa [#allocation7], 0 }
   0x2   :  { %9 = vsyncpa [#allocation5], 0  ;;  %s174_s9 = smov [#allocation3]   ;;  %s102_s13 = scalar_lea.hbm %s243_s0, 256 }
   0x3   :  { %s15_s10 = sshll.u32 %s174_s9, 4  ;;  %p103_p0 = scmp.ne.s32.totalorder %s243_s0, %s102_s13  ;;  %s16_s10 = int_to_ptr.vmem [resolvable:$true] %s15_s10 }
   0x4   :  { %p106_p1 = scmp.lt.u32.totalorder %s102_s13, %s243_s0 }
   0x6   :  { %p108_p2 = pnand %p106_p1, %p103_p0 }
   0x8   :  { %111 = shalt.err (!%p108_p2)
}
   0x9   :  { %s112_s18 = scalar_lea.vmem %s16_s10, 256  ;;  %p117_p4 = scmp.lt.s32.totalorder %s16_s10, %s16_s10 }
   0xa   :  { %p113_p3 = scmp.ne.s32.totalorder %s16_s10, %s112_s18  ;;  %p118_p5 = scmp.lt.s32.totalorder %s112_s18, %s112_s18 }
   0xc   :  { %p119_p6 = por %p118_p5, %p117_p4 }
   0xe   :  { %p120_p7 = pnand %p119_p6, %p113_p3 }
  0x10   :  { %123 = shalt.err (!%p120_p7)
}
  0x11   :  { %s175_s19 = smov 128   ;;  %s176_s20 = smov 8  }
  0x12   :  { %21 = dma.hbm_to_vmem [thread:$0]  %s243_s0, 256, %s16_s10, [#allocation4], %s175_s19, %s175_s19, %s176_s20  }
  0x13   :  { %s177_s23 = smov [#allocation6]   ;;  %s124_s27 = scalar_lea.hbm %s244_s1, 16 }
  0x14   :  { %s28_s24 = sshll.u32 %s177_s23, 4  ;;  %p125_p8 = scmp.ne.s32.totalorder %s244_s1, %s124_s27  ;;  %s29_s24 = int_to_ptr.vmem [resolvable:$true] %s28_s24 }
  0x15   :  { %p128_p9 = scmp.lt.u32.totalorder %s124_s27, %s244_s1 }
  0x17   :  { %p130_p10 = pnand %p128_p9, %p125_p8 }
  0x19   :  { %133 = shalt.err (!%p130_p10)
}
  0x1a   :  { %s134_s4 = scalar_lea.vmem %s29_s24, 16  ;;  %s138_s0 = scalar_lea.vmem %s29_s24, 32 }
  0x1b   :  { %p135_p11 = scmp.ne.s32.totalorder %s29_s24, %s134_s4  ;;  %p139_p12 = scmp.lt.s32.totalorder %s29_s24, %s29_s24 }
  0x1c   :  { %p140_p13 = scmp.lt.s32.totalorder %s138_s0, %s134_s4 }
  0x1e   :  { %p141_p0 = por %p140_p13, %p139_p12 }
  0x20   :  { %p142_p1 = pnand %p141_p0, %p135_p11 }
  0x22   :  { %145 = shalt.err (!%p142_p1)
}
  0x23   :  { %31 = dma.hbm_to_vmem [thread:$0]  %s244_s1, 16, %s29_s24, [#allocation7]  }
  0x24   :  { %168 = dma.done.wait [#allocation4], 256  }
  0x25   :  { %169 = vsyncadd [#allocation4], 4294967040 }
  0x26   :  { %170 = dma.done.wait [#allocation7], 16  }
  0x27   :  { %171 = vsyncadd [#allocation7], 4294967280  ;;  %vm42_vm0 = vcmask 7168   ;;  %v178_v0 = vmov 0.0   ;;  %v45_v1 = vld [vmem:[#allocation3] sm:$0xff]  ;;  %vm58_vm1 = vcmask 261120  }
  0x28   :  { %43 = vst.msk [vmem:[#allocation2] sm:$0xff] %vm42_vm0, %v178_v0  ;;  %44 = vst.msk [vmem:[#allocation2 + $0x8] sm:$0xff] %vm42_vm0, %v178_v0  ;;  %v95_v2 = vld [vmem:[#allocation6] ss:$0 sm:$0xff]  ;;  %v46_v3 = vld [vmem:[#allocation3 + $0x8] sm:$0xff]  ;;  %s179_s1 = smov [#allocation8]  }
  0x29   :  { %v56_v4 = vmul.f32 %v95_v2, %v45_v1  ;;  %v57_v5 = vmul.f32 %v95_v2, %v46_v3  ;;  %s82_s7 = sshll.u32 %s179_s1, 4  ;;  %s83_s7 = int_to_ptr.vmem [resolvable:$true] %s82_s7 }
  0x2a   :  { %s146_s8 = scalar_lea.vmem %s83_s7, 256  ;;  %p151_p3 = scmp.lt.s32.totalorder %s83_s7, %s83_s7 }
  0x2b   :  { %v59_v6 = vsel %vm58_vm1, %v56_v4, 0.0  ;;  %v62_v7 = vsel %vm58_vm1, %v57_v5, 0.0  ;;  %p147_p2 = scmp.ne.s32.totalorder %s83_s7, %s146_s8  ;;  %p152_p4 = scmp.lt.s32.totalorder %s146_s8, %s146_s8 }
  0x2c   :  { %60 = vadd.xlane.f32.xlu0 %v59_v6 }
  0x2d   :  { %p153_p5 = por %p152_p4, %p151_p3 }
  0x2f   :  { %v48_v8 = vld [vmem:[#allocation2] sm:$0xff]  ;;  %v49_v11 = vld [vmem:[#allocation2 + $0x8] sm:$0xff]  ;;  %p154_p6 = pnand %p153_p5, %p147_p2 }
  0x30   :  { %63 = vadd.xlane.f32.xlu0 %v62_v7 }
  0xb9   :  { %v61_v9 = vpop.xlane.xlu0 %60 }
  0xba   :  { %v65_v10 = vadd.f32 %v61_v9, %v48_v8 }
  0xbc   :  { %68 = vst.msk [vmem:[#allocation2] sm:$0xff] %vm42_vm0, %v65_v10 }
  0xbd   :  { %v64_v12 = vpop.xlane.xlu0 %63 }
  0xbe   :  { %v66_v13 = vadd.f32 %v64_v12, %v49_v11 }
  0xc0   :  { %69 = vst.msk [vmem:[#allocation2 + $0x8] sm:$0xff] %vm42_vm0, %v66_v13 }
  0xc3   :  { %v73_v14 = vld [vmem:[#allocation2] sm:$0xff] }
  0xc4   :  { %75 = vst.msk [vmem:[#allocation8] sm:$0xff] %vm42_vm0, %v73_v14 }
  0xc7   :  { %v74_v15 = vld [vmem:[#allocation2 + $0x8] sm:$0xff] }
  0xc8   :  { %76 = vst.msk [vmem:[#allocation8 + $0x8] sm:$0xff] %vm42_vm0, %v74_v15 }
  0xc9   :  { %157 = shalt.err (!%p154_p6)
}
  0xca   :  { %s158_s11 = scalar_lea.hbm %s245_s2, 256 }
  0xcb   :  { %p159_p7 = scmp.ne.s32.totalorder %s245_s2, %s158_s11  ;;  %p162_p8 = scmp.lt.u32.totalorder %s158_s11, %s245_s2 }
  0xcd   :  { %p164_p9 = pnand %p162_p8, %p159_p7 }
  0xcf   :  { %167 = shalt.err (!%p164_p9)
}
  0xd0   :  { %88 = dma.vmem_to_hbm [thread:$0]  %s83_s7, 256, %s245_s2, [#allocation5], %s175_s19, %s175_s19, %s176_s20  }
  0xd1   :  { %172 = dma.done.wait [#allocation5], 256  }
  0xd2   :  { %173 = vsyncadd [#allocation5], 4294967040 }
  0xd3   :  { %92 = vsyncpa [#allocation4], 1 }
  0xd4   :  { %93 = vsyncpa [#allocation7], 1 }
  0xd5   :  { %94 = vsyncpa [#allocation5], 1 }

</bundles_post_ra>
